<compile_context>
chip_gen: v5e
topology: v5e:2x2
jax: 0.10.0
libtpu: 0.0.40
codegen_flags: <defaults>
</compile_context>

<pallas_src>
import jax
import jax.numpy as jnp
from jax.experimental import pallas as pl
from jax.experimental.pallas import tpu as pltpu


def particlenet_kernel(xT_ref,
                       w1_ref, b1_ref,
                       w2_ref, b2_ref,
                       w3_ref, b3_ref,
                       w4_ref, b4_ref,
                       oT_ref):
    """Batch-on-lanes fused MLP forward.

    xT_ref: (F, tile_b) bf16/f32, w_i: (out_i, in_i) bf16/f32, b_i: (out_i, 1) f32,
    oT_ref: (out_size, tile_b) f32.  Dropout == identity (eval-mode semantics).
    """
    cdt = w1_ref.dtype  # MXU input dtype (bf16); accumulation is always f32.

    xT = xT_ref[...]                                            # (F, tile_b)

    # Layer 1: Linear + ReLU   (Dropout -> identity at inference)
    h = jnp.dot(w1_ref[...], xT, preferred_element_type=jnp.float32)
    h = jnp.maximum(h + b1_ref[...], 0.0)                       # f32 elementwise

    # Layer 2: Linear + ReLU   (Dropout -> identity at inference)
    h = jnp.dot(w2_ref[...], h.astype(cdt), preferred_element_type=jnp.float32)
    h = jnp.maximum(h + b2_ref[...], 0.0)

    # Layer 3: Linear + ReLU
    h = jnp.dot(w3_ref[...], h.astype(cdt), preferred_element_type=jnp.float32)
    h = jnp.maximum(h + b3_ref[...], 0.0)

    # Layer 4: Linear (no activation)
    out = jnp.dot(w4_ref[...], h.astype(cdt),
                  preferred_element_type=jnp.float32) + b4_ref[...]
    oT_ref[...] = out.astype(oT_ref.dtype)                      # lane-dense store


def _choose_tile_b(B, *, max_tile=8192, lane=128):
    """Largest lane-aligned tile dividing B; prefers an even step count >= 2.

    Even >=2 steps keep both v7x TensorCores busy and enable the BlockSpec
    software pipeline; odd-step / single-step fallbacks remain correct.
    """
    if B <= lane or B % lane != 0:
        return B                              # single full-shape block (always legal)
    limit = min(max_tile, B // 2)             # guarantee >= 2 grid steps
    limit -= limit % lane
    best_odd = None
    for cand in range(limit, lane - 1, -lane):
        if B % cand == 0:
            if (B // cand) % 2 == 0:          # even split across the 2 v7x TCs
                return cand
            if best_odd is None:
                best_odd = cand
    return best_odd if best_odd is not None else B


def particlenet_forward(x, params, *, tile_b=None, use_bf16=True):
    """x: (B, input_size) f32. params: w1..w4 of shape (out,in), b1..b4 of shape (out,1).

    Returns (B, output_size) f32 (eval-mode forward; Dropout == identity).
    """
    B, F = x.shape
    hidden = params["w1"].shape[0]
    out_size = params["w4"].shape[0]

    cdt = jnp.bfloat16 if use_bf16 else jnp.float32
    if tile_b is None:
        tile_b = _choose_tile_b(B)
    assert B % tile_b == 0, "tile_b must divide the batch size"
    assert tile_b == B or tile_b % 128 == 0, "tile_b must be lane-aligned"

    # One-time layout change: batch -> lane axis.  The bf16 cast is fused into this
    # single transpose pass, so there is no separate dtype-conversion pass over x and
    # the kernel's dominant input stream is already bf16.
    xT = jnp.transpose(x).astype(cdt)                           # (F, B)

    def batch_map(i):
        return (0, i)

    def full_map(i):
        return (0, 0)

    in_specs = [pl.BlockSpec((F, tile_b), batch_map)]
    args = [xT]
    for k in ("w1", "b1", "w2", "b2", "w3", "b3", "w4", "b4"):
        v = params[k]
        if k.startswith("w"):
            v = v.astype(cdt)              # weights on the bf16 MXU path
        in_specs.append(pl.BlockSpec(v.shape, full_map))
        args.append(v)

    flops = 2 * B * (F * hidden + 2 * hidden * hidden + hidden * out_size)
    bytes_accessed = (xT.size * xT.dtype.itemsize
                      + B * out_size * 4
                      + sum(int(a.size) * a.dtype.itemsize for a in args[1:]))

    oT = pl.pallas_call(
        particlenet_kernel,
        out_shape=jax.ShapeDtypeStruct((out_size, B), jnp.float32),
        grid_spec=pltpu.PrefetchScalarGridSpec(
            num_scalar_prefetch=0,
            grid=(B // tile_b,),
            in_specs=in_specs,
            out_specs=pl.BlockSpec((out_size, tile_b), batch_map),
        ),
        compiler_params=pltpu.CompilerParams(
            dimension_semantics=("parallel",)),
        cost_estimate=pl.CostEstimate(flops=flops,
                                      transcendentals=0,
                                      bytes_accessed=bytes_accessed),
    )(*args)

    # Tiny (out_size, B) -> (B, out_size) relayout back to the PyTorch convention.
    return jnp.transpose(oT)


def init_params(key, input_size, hidden_size, output_size):
    """Deterministic synthetic init (PyTorch-Linear-like uniform ranges).

    Weights stored in PyTorch's native (out_features, in_features) orientation;
    biases stored as (out_features, 1) so they broadcast along the lane axis.
    """
    sizes = [(hidden_size, input_size),
             (hidden_size, hidden_size),
             (hidden_size, hidden_size),
             (output_size, hidden_size)]
    params = {}
    for i, (fan_out, fan_in) in enumerate(sizes, start=1):
        key, kw, kb = jax.random.split(key, 3)
        bound = 1.0 / (fan_in ** 0.5)
        params[f"w{i}"] = jax.random.uniform(
            kw, (fan_out, fan_in), jnp.float32, minval=-bound, maxval=bound)
        params[f"b{i}"] = jax.random.uniform(
            kb, (fan_out, 1), jnp.float32, minval=-bound, maxval=bound)
    return params


def reference_forward(x, params, *, compute_dtype=jnp.float32):
    """Pure-JAX reference. compute_dtype=bfloat16 mirrors the kernel's casting."""
    cd = compute_dtype

    def lin(h, w, b):
        return (jnp.dot(h.astype(cd), w.astype(cd).T,
                        preferred_element_type=jnp.float32) + b.reshape(1, -1))

    h = jnp.maximum(lin(x, params["w1"], params["b1"]), 0.0)
    h = jnp.maximum(lin(h, params["w2"], params["b2"]), 0.0)
    h = jnp.maximum(lin(h, params["w3"], params["b3"]), 0.0)
    return lin(h, params["w4"], params["b4"])


if __name__ == "__main__":
    input_size, hidden_size, output_size = 8, 32, 4
    batch = 512  # chooser picks tile_b=256 -> grid=(2,): pipelined, even split for v7x

    key = jax.random.PRNGKey(0)
    key, kx = jax.random.split(key)
    x = jax.random.normal(kx, (batch, input_size), jnp.float32)
    params = init_params(key, input_size, hidden_size, output_size)

    out = jax.block_until_ready(particlenet_forward(x, params))

    ref_bf16 = reference_forward(x, params, compute_dtype=jnp.bfloat16)
    ref_f32 = reference_forward(x, params, compute_dtype=jnp.float32)

    assert out.shape == (batch, output_size)
    # Tight check against a reference with identical bf16 casting / f32 accumulation.
    assert jnp.allclose(out, ref_bf16, atol=2e-3, rtol=2e-3)
    # Loose check against the pure-f32 reference (bf16 rounding headroom).
    assert jnp.allclose(out, ref_f32, atol=7e-2, rtol=7e-2)

    print("KERNEL_OK")
</pallas_src>

<mosaic_0001>
module attributes {stable_mosaic.version = 11 : i64} {
  func.func @particlenet_kernel(%arg0: i32, %arg1: memref<8x256xbf16, #tpu.memory_space<vmem>>, %arg2: memref<32x8xbf16, #tpu.memory_space<vmem>>, %arg3: memref<32x1xf32, #tpu.memory_space<vmem>>, %arg4: memref<32x32xbf16, #tpu.memory_space<vmem>>, %arg5: memref<32x1xf32, #tpu.memory_space<vmem>>, %arg6: memref<32x32xbf16, #tpu.memory_space<vmem>>, %arg7: memref<32x1xf32, #tpu.memory_space<vmem>>, %arg8: memref<4x32xbf16, #tpu.memory_space<vmem>>, %arg9: memref<4x1xf32, #tpu.memory_space<vmem>>, %arg10: memref<4x256xf32, #tpu.memory_space<vmem>>) attributes {dimension_semantics = [#tpu.dimension_semantics<parallel>], iteration_bounds = array<i64: 2>, scalar_prefetch = 0 : i64, scratch_operands = 0 : i64, tpu.core_type = #tpu.core_type<tc>, window_params = [{transform_indices = @transform_0, window_bounds = array<i64: 8, 256>}, {pipeline_mode = #tpu.pipeline_mode<synchronous>, transform_indices = @transform_1, window_bounds = array<i64: 32, 8>}, {pipeline_mode = #tpu.pipeline_mode<synchronous>, transform_indices = @transform_2, window_bounds = array<i64: 32, 1>}, {pipeline_mode = #tpu.pipeline_mode<synchronous>, transform_indices = @transform_3, window_bounds = array<i64: 32, 32>}, {pipeline_mode = #tpu.pipeline_mode<synchronous>, transform_indices = @transform_4, window_bounds = array<i64: 32, 1>}, {pipeline_mode = #tpu.pipeline_mode<synchronous>, transform_indices = @transform_5, window_bounds = array<i64: 32, 32>}, {pipeline_mode = #tpu.pipeline_mode<synchronous>, transform_indices = @transform_6, window_bounds = array<i64: 32, 1>}, {pipeline_mode = #tpu.pipeline_mode<synchronous>, transform_indices = @transform_7, window_bounds = array<i64: 4, 32>}, {pipeline_mode = #tpu.pipeline_mode<synchronous>, transform_indices = @transform_8, window_bounds = array<i64: 4, 1>}, {transform_indices = @transform_9, window_bounds = array<i64: 4, 256>}]} {
    %c0 = arith.constant 0 : index
    %c0_0 = arith.constant 0 : index
    %0 = vector.load %arg1[%c0, %c0_0] : memref<8x256xbf16, #tpu.memory_space<vmem>>, vector<8x256xbf16>
    %c0_1 = arith.constant 0 : index
    %c0_2 = arith.constant 0 : index
    %1 = vector.load %arg2[%c0_1, %c0_2] : memref<32x8xbf16, #tpu.memory_space<vmem>>, vector<32x8xbf16>
    %cst = arith.constant dense<0.000000e+00> : vector<32x256xf32>
    %2 = tpu.matmul %1, %0, %cst {dimension_numbers = #tpu.dot_dimension_numbers<[1], [0], [0], [1], [0, 0, 1, 1], [], []>} : vector<32x8xbf16>, vector<8x256xbf16>, vector<32x256xf32> -> vector<32x256xf32>
    %c0_3 = arith.constant 0 : index
    %c0_4 = arith.constant 0 : index
    %3 = vector.load %arg3[%c0_3, %c0_4] : memref<32x1xf32, #tpu.memory_space<vmem>>, vector<32x1xf32>
    %4 = vector.broadcast %3 : vector<32x1xf32> to vector<32x256xf32>
    %5 = arith.addf %2, %4 : vector<32x256xf32>
    %cst_5 = arith.constant 0.000000e+00 : f32
    %6 = vector.broadcast %cst_5 : f32 to vector<32x256xf32>
    %7 = arith.maximumf %5, %6 : vector<32x256xf32>
    %c0_6 = arith.constant 0 : index
    %c0_7 = arith.constant 0 : index
    %8 = vector.load %arg4[%c0_6, %c0_7] : memref<32x32xbf16, #tpu.memory_space<vmem>>, vector<32x32xbf16>
    %9 = arith.truncf %7 : vector<32x256xf32> to vector<32x256xbf16>
    %cst_8 = arith.constant dense<0.000000e+00> : vector<32x256xf32>
    %10 = tpu.matmul %8, %9, %cst_8 {dimension_numbers = #tpu.dot_dimension_numbers<[1], [0], [0], [1], [0, 0, 1, 1], [], []>} : vector<32x32xbf16>, vector<32x256xbf16>, vector<32x256xf32> -> vector<32x256xf32>
    %c0_9 = arith.constant 0 : index
    %c0_10 = arith.constant 0 : index
    %11 = vector.load %arg5[%c0_9, %c0_10] : memref<32x1xf32, #tpu.memory_space<vmem>>, vector<32x1xf32>
    %12 = vector.broadcast %11 : vector<32x1xf32> to vector<32x256xf32>
    %13 = arith.addf %10, %12 : vector<32x256xf32>
    %cst_11 = arith.constant 0.000000e+00 : f32
    %14 = vector.broadcast %cst_11 : f32 to vector<32x256xf32>
    %15 = arith.maximumf %13, %14 : vector<32x256xf32>
    %c0_12 = arith.constant 0 : index
    %c0_13 = arith.constant 0 : index
    %16 = vector.load %arg6[%c0_12, %c0_13] : memref<32x32xbf16, #tpu.memory_space<vmem>>, vector<32x32xbf16>
    %17 = arith.truncf %15 : vector<32x256xf32> to vector<32x256xbf16>
    %cst_14 = arith.constant dense<0.000000e+00> : vector<32x256xf32>
    %18 = tpu.matmul %16, %17, %cst_14 {dimension_numbers = #tpu.dot_dimension_numbers<[1], [0], [0], [1], [0, 0, 1, 1], [], []>} : vector<32x32xbf16>, vector<32x256xbf16>, vector<32x256xf32> -> vector<32x256xf32>
    %c0_15 = arith.constant 0 : index
    %c0_16 = arith.constant 0 : index
    %19 = vector.load %arg7[%c0_15, %c0_16] : memref<32x1xf32, #tpu.memory_space<vmem>>, vector<32x1xf32>
    %20 = vector.broadcast %19 : vector<32x1xf32> to vector<32x256xf32>
    %21 = arith.addf %18, %20 : vector<32x256xf32>
    %cst_17 = arith.constant 0.000000e+00 : f32
    %22 = vector.broadcast %cst_17 : f32 to vector<32x256xf32>
    %23 = arith.maximumf %21, %22 : vector<32x256xf32>
    %c0_18 = arith.constant 0 : index
    %c0_19 = arith.constant 0 : index
    %24 = vector.load %arg8[%c0_18, %c0_19] : memref<4x32xbf16, #tpu.memory_space<vmem>>, vector<4x32xbf16>
    %25 = arith.truncf %23 : vector<32x256xf32> to vector<32x256xbf16>
    %cst_20 = arith.constant dense<0.000000e+00> : vector<4x256xf32>
    %26 = tpu.matmul %24, %25, %cst_20 {dimension_numbers = #tpu.dot_dimension_numbers<[1], [0], [0], [1], [0, 0, 1, 1], [], []>} : vector<4x32xbf16>, vector<32x256xbf16>, vector<4x256xf32> -> vector<4x256xf32>
    %c0_21 = arith.constant 0 : index
    %c0_22 = arith.constant 0 : index
    %27 = vector.load %arg9[%c0_21, %c0_22] : memref<4x1xf32, #tpu.memory_space<vmem>>, vector<4x1xf32>
    %28 = vector.broadcast %27 : vector<4x1xf32> to vector<4x256xf32>
    %29 = arith.addf %26, %28 : vector<4x256xf32>
    %c0_23 = arith.constant 0 : index
    %c0_24 = arith.constant 0 : index
    %30 = vector.load %arg10[%c0_23, %c0_24] : memref<4x256xf32, #tpu.memory_space<vmem>>, vector<4x256xf32>
    tpu.vector_store %arg10[%c0_23, %c0_24], %29 {strides = array<i32>} : memref<4x256xf32, #tpu.memory_space<vmem>>, vector<4x256xf32>,
    return
  }
  func.func @transform_0(%arg0: i32) -> (i32, i32) {
    %c0_i32 = arith.constant 0 : i32
    %c0_i32_0 = arith.constant 0 : i32
    return %c0_i32, %arg0 : i32, i32
  }
  func.func @transform_1(%arg0: i32) -> (i32, i32) {
    %c0_i32 = arith.constant 0 : i32
    %c0_i32_0 = arith.constant 0 : i32
    %c0_i32_1 = arith.constant 0 : i32
    return %c0_i32, %c0_i32_0 : i32, i32
  }
  func.func @transform_2(%arg0: i32) -> (i32, i32) {
    %c0_i32 = arith.constant 0 : i32
    %c0_i32_0 = arith.constant 0 : i32
    %c0_i32_1 = arith.constant 0 : i32
    return %c0_i32, %c0_i32_0 : i32, i32
  }
  func.func @transform_3(%arg0: i32) -> (i32, i32) {
    %c0_i32 = arith.constant 0 : i32
    %c0_i32_0 = arith.constant 0 : i32
    %c0_i32_1 = arith.constant 0 : i32
    return %c0_i32, %c0_i32_0 : i32, i32
  }
  func.func @transform_4(%arg0: i32) -> (i32, i32) {
    %c0_i32 = arith.constant 0 : i32
    %c0_i32_0 = arith.constant 0 : i32
    %c0_i32_1 = arith.constant 0 : i32
    return %c0_i32, %c0_i32_0 : i32, i32
  }
  func.func @transform_5(%arg0: i32) -> (i32, i32) {
    %c0_i32 = arith.constant 0 : i32
    %c0_i32_0 = arith.constant 0 : i32
    %c0_i32_1 = arith.constant 0 : i32
    return %c0_i32, %c0_i32_0 : i32, i32
  }
  func.func @transform_6(%arg0: i32) -> (i32, i32) {
    %c0_i32 = arith.constant 0 : i32
    %c0_i32_0 = arith.constant 0 : i32
    %c0_i32_1 = arith.constant 0 : i32
    return %c0_i32, %c0_i32_0 : i32, i32
  }
  func.func @transform_7(%arg0: i32) -> (i32, i32) {
    %c0_i32 = arith.constant 0 : i32
    %c0_i32_0 = arith.constant 0 : i32
    %c0_i32_1 = arith.constant 0 : i32
    return %c0_i32, %c0_i32_0 : i32, i32
  }
  func.func @transform_8(%arg0: i32) -> (i32, i32) {
    %c0_i32 = arith.constant 0 : i32
    %c0_i32_0 = arith.constant 0 : i32
    %c0_i32_1 = arith.constant 0 : i32
    return %c0_i32, %c0_i32_0 : i32, i32
  }
  func.func @transform_9(%arg0: i32) -> (i32, i32) {
    %c0_i32 = arith.constant 0 : i32
    %c0_i32_0 = arith.constant 0 : i32
    return %c0_i32, %arg0 : i32, i32
  }
}

</mosaic_0001>

<bundles_post_ra>
// kernel: tpu_custom_call.1
= control target key start
LH: loop header
LB: loop body
LE: loop exit
PB: predicated region body
PF: predicated region fallthrough
CT: control target
= control target key end

     0   :  { %14 = vsyncpa [#allocation3], 0  ;;  %s1122_s0 = inlined_call_operand.vmem [shape: bf16[8,512], index: 0, kind: input, shape index: {}]   ;;  %s1123_s1 = inlined_call_operand.vmem [shape: bf16[32,8], index: 1, kind: input, shape index: {}]   ;;  %s1124_s2 = inlined_call_operand.vmem [shape: f32[32,1], index: 2, kind: input, shape index: {}]   ;;  %s1125_s3 = inlined_call_operand.vmem [shape: bf16[32,32], index: 3, kind: input, shape index: {}]   ;;  %s1126_s4 = inlined_call_operand.vmem [shape: f32[32,1], index: 4, kind: input, shape index: {}]   ;;  %s1127_s5 = inlined_call_operand.vmem [shape: bf16[32,32], index: 5, kind: input, shape index: {}]   ;;  %s1128_s6 = inlined_call_operand.vmem [shape: f32[32,1], index: 6, kind: input, shape index: {}]   ;;  %s1129_s7 = inlined_call_operand.vmem [shape: bf16[4,32], index: 7, kind: input, shape index: {}]   ;;  %s1130_s8 = inlined_call_operand.vmem [shape: f32[4,1], index: 8, kind: input, shape index: {}]   ;;  %s1131_s9 = inlined_call_operand.hbm [shape: f32[4,512], index: 9, kind: output, shape index: {}]  }
   0x1   :  { %16 = vsyncpa [#allocation3 + $0x1], 0  ;;  %s965_s30 = smov 0   ;;  %s967_s10 = smov 0  }
   0x2   :  { %s969_s11 = smov 0   ;;  %s971_s12 = smov 0  }
   0x3 LB: > { %s986_s13 = sadd.s32 4294967295, %s912_s12   ;;  %s750_s14 = sadd.s32 4294967294, %s912_s12   ;;  %s912_s12 = sphi %s971_s12, %s1137_s12   ;;  %s908_s11 = sphi %s969_s11, %s1136_s11   ;;  %s904_s10 = sphi %s967_s10, %s1135_s10   ;;  %s900_s30 = sphi %s965_s30, %s1134_s30  }
   0x4   : > { %s990_s15 = sadd.s32 1, %s912_s12   ;;  %s223_s16 = sadd.s32 1, %s908_s11 }
   0x5   : > { %s220_s17 = ssub.s32 %s912_s12, %s990_s15  ;;  %p233_p0 = scmp.ne.s32.totalorder %s908_s11, %s904_s10 }
   0x6   : > { %p221_p1 = scmp.eq.s32.totalorder %s220_s17, 0  ;;  %p234_p2 = scmp.eq.s32.totalorder %s986_s13, 1 }
   0x7   : > { %p239_p3 = scmp.ne.s32.totalorder %s904_s10, %s900_s30  ;;  %p240_p4 = scmp.eq.s32.totalorder %s750_s14, 1 }
   0x8   : > { %s1001_s18 = scalar_select %p221_p1, %s908_s11, %s223_s16  }
   0x9   : > { %p1003_p5 = por %p234_p2, %p233_p0  ;;  %p1007_p6 = por %p240_p4, %p239_p3 }
   0xa   : > { %p753_p7 = scmp.ge.s32.totalorder %s912_s12, 1  ;;  %p291_p8 = scmp.lt.s32.totalorder %s912_s12, 3 }
   0xc   : > { %p292_p9 = pnand %p753_p7, %p291_p8 }
   0xd   : > { %s755_s23 = sshll.u32 (!%p292_p9), %s986_s13, 1  ;;  %s324_s14 = sand.u32 (!%p292_p9), 1, %s904_s10  }
   0xe   : > { %295 = sbr.rel (%p292_p9) target bundleno = 666 (0x29a), region = 56  ;;  %p328_p10 = scmp.lt.s32.totalorder (!%p292_p9), %s755_s23, 3 }
   0xf   : > { %s754_s16 = sshll.u32 (!%p292_p9), %s324_s14, 3  ;;  %s806_s17 = sshll.u32 (!%p292_p9), %s986_s13, 3 }
  0x10   : > { %s326_s24 = scalar_lea.vmem (!%p292_p9), [#allocation2], %s754_s16  ;;  %s675_s13 = scalar_lea.sflag (!%p292_p9), [#allocation3], %s324_s14 }
  0x11   : > { %s688_s25 = sshll.u32 (!%p292_p9), %s326_s24, 4  ;;  %s870_s16 = scalar_lea.hbm (!%p292_p9), %s1131_s9, 16  ;;  %s689_s25 = int_to_ptr.vmem [resolvable:$true] %s688_s25 }
  0x13   : > { %v342_v0 = vld [vmem:[%s1124_s2 + $0x10] sm:$0xff]  ;;  %v914_v1 = vmov 0   ;;  %v340_v2 = vld [vmem:[%s1124_s2] sm:$0xff]  ;;  %s1139_s23 = smov (!%p328_p10, %s755_s23), 3  ;;  %v343_v4 = vld [vmem:[%s1124_s2 + $0x18] sm:$0xff]  ;;  %vm386_vm0 = vcmask 1043456  }
  0x14   : > { %847 = vset.pattern.permute.xlu0 %v914_v1  ;;  %848 = vset.pattern.permute.xlu1 %v914_v1  ;;  %s756_s26 = sshll.u32 %s1139_s23, 2  ;;  %v341_v5 = vld [vmem:[%s1124_s2 + $0x8] sm:$0xff]  ;;  %v800_v12 = vld [vmem:[%s1123_s1] sm:$0xff]  ;;  %vm379_vm1 = vcmask 64512   ;;  %v545_v15 = vld [vmem:[%s1128_s6 + $0x18] sm:$0xff]  ;;  %vm481_vm2 = vcmask 261120   ;;  %s686_s23 = scalar_lea.hbm %s1131_s9, %s806_s17 }
  0x15   : > { %356 = vperm.xlu0 %847, %v342_v0   ;;  %346 = vperm.xlu1 %848, %v340_v2   ;;  %s331_s29 = scalar_lea.vmem %s1122_s0, %s756_s26  ;;  %v447_v13 = vld [vmem:[%s1126_s4] sm:$0xff]  ;;  %v448_v14 = vld [vmem:[%s1126_s4 + $0x8] sm:$0xff]  ;;  %v449_v27 = vld [vmem:[%s1126_s4 + $0x10] sm:$0xff]  ;;  %s690_s26 = sshll.u32 %s686_s23, 4  ;;  %s691_s26 = int_to_ptr.hbm [resolvable:$true] %s690_s26 }
  0x16   : > { %849 = vset.pattern.permute.xlu2 %v914_v1  ;;  %v335_v3 = vld [vmem:[%s331_s29] sm:$0xff]  ;;  %v801_v17 = vld [vmem:[%s1123_s1 + $0x8] sm:$0xff]  ;;  %v450_v48 = vld [vmem:[%s1126_s4 + $0x18] sm:$0xff]  ;;  %s864_s27 = sshra.s32 %s691_s26, 4  ;;  %s865_s27 = int_to_ptr.hbm [resolvable:$true] %s864_s27 }
  0x17   : > { %v375_v6 = vunpack.c.l.b16 %v335_v3  ;;  %v376_v7 = vunpack.c.h.b16 %v335_v3  ;;  %v542_v16 = vld [vmem:[%s1128_s6] sm:$0xff]  ;;  %463 = vperm.xlu2 %849, %v449_v27   ;;  %v544_v54 = vld [vmem:[%s1128_s6 + $0x10] sm:$0xff]  ;;  %v543_v55 = vld [vmem:[%s1128_s6 + $0x8] sm:$0xff]  ;;  %s866_s28 = scalar_lea.hbm %s865_s27, 8  ;;  %p871_p0 = scmp.lt.s32.totalorder %s865_s27, %s1131_s9 }
  0x18   : > { %v633_v18 = vld [vmem:[%s1130_s8] sm:$0xf]  ;;  %v803_v56 = vld [vmem:[%s1125_s3 + $0x8] sm:$0xff]  ;;  %p867_p11 = scmp.ne.s32.totalorder %s865_s27, %s866_s28  ;;  %p872_p1 = scmp.lt.s32.totalorder %s870_s16, %s866_s28 }
  0x19   : > { %v377_v8 = vpack.c.b16 %v375_v6, %v375_v6  ;;  %v378_v9 = vpack.c.b16 %v376_v7, %v376_v7  ;;  %v802_v53 = vld [vmem:[%s1125_s3] sm:$0xff] }
  0x1a   : > { %p868_p12 = pnand %p867_p11, %p1003_p5  ;;  %p873_p2 = por %p872_p1, %p871_p0 }
  0x1b   : > { %v388_v10 = vsel %vm386_vm0, %v377_v8, 0  ;;  %v391_v11 = vsel %vm386_vm0, %v378_v9, 0 }
  0x1c   : > { %400 = vmatpush.bf16.msra.mxu0 %v388_v10  ;;  %419 = vmatpush.bf16.msra.mxu1 %v391_v11  ;;  %p869_p13 = pneg %p868_p12 }
  0x1d   : > { %361 = vperm.xlu0 %847, %v343_v4   ;;  %351 = vperm.xlu1 %848, %v341_v5  }
  0x1e   : > { %p874_p3 = pnand %p873_p2, %p869_p13 }
  0x1f   : > { %765 = vmatmul.msk.bf16.vlgmr.msra.gmra.mxu0 %vm379_vm1, %v800_v12  ;;  %767 = vmatmul.msk.bf16.vlgmr.msra.gmra.mxu1 %vm379_vm1, %v800_v12 }
  0x20   : > { %468 = vperm.xlu2 %849, %v450_v48  }
  0x25   : > { %453 = vperm.xlu0 %847, %v447_v13   ;;  %458 = vperm.xlu1 %848, %v448_v14  }
  0x28   : > { %558 = vperm.xlu2 %849, %v544_v54  }
  0x2d   : > { %563 = vperm.xlu0 %847, %v545_v15   ;;  %548 = vperm.xlu1 %848, %v542_v16  }
  0x2f   : > { %766 = vmatmul.msk.bf16.gmra.mxu0 %vm379_vm1, %v801_v17  ;;  %768 = vmatmul.msk.bf16.gmra.mxu1 %vm379_vm1, %v801_v17 }
  0x30   : > { %553 = vperm.xlu2 %849, %v543_v55  }
  0x35   : > { %636 = vperm.xlu0 %847, %v633_v18  }
  0x71   : > { %v464_v61 = vpop.permute.xlu2 %463 }
  0x7a   : > { %v469_v1 = vpop.permute.xlu2 %468 }
  0x87   : > { %v357_v23 = vpop.permute.xlu0 %356  ;;  %v347_v24 = vpop.permute.xlu1 %346 }
  0x8f   : > { %v362_v28 = vpop.permute.xlu0 %361  ;;  %v352_v29 = vpop.permute.xlu1 %351 }
  0x97   : > { %v459_v0 = vpop.permute.xlu1 %458  ;;  %v454_v6 = vpop.permute.xlu0 %453 }
  0x9c   : > { %v402_v19 = vpop.f32.mrf.mxu0  ;;  %v421_v20 = vpop.f32.mrf.mxu1 }
  0x9d   : > { %v403_v38 = vadd.f32 %v402_v19, %v347_v24  ;;  %v422_v39 = vadd.f32 %v421_v20, %v347_v24 }
  0x9f   : > { %v431_v49 = vmax.f32 %v403_v38, 0.0  ;;  %v432_v50 = vmax.f32 %v422_v39, 0.0 }
  0xa4   : > { %v404_v21 = vpop.f32.mrf.mxu0  ;;  %v423_v22 = vpop.f32.mrf.mxu1 }
  0xa5   : > { %v405_v34 = vadd.f32 %v404_v21, %v352_v29  ;;  %v424_v35 = vadd.f32 %v423_v22, %v352_v29 }
  0xa7   : > { %v433_v44 = vmax.f32 %v405_v34, 0.0  ;;  %v434_v45 = vmax.f32 %v424_v35, 0.0  ;;  %v564_v34 = vpop.permute.xlu0 %563 }
  0xa9   : > { %v443_v51 = vpack.c.bf16 %v433_v44, %v431_v49  ;;  %v444_v52 = vpack.c.bf16 %v434_v45, %v432_v50 }
  0xac   : > { %v407_v25 = vpop.f32.mrf.mxu0  ;;  %v426_v26 = vpop.f32.mrf.mxu1 }
  0xad   : > { %v408_v30 = vadd.f32 %v407_v25, %v357_v23  ;;  %v427_v31 = vadd.f32 %v426_v26, %v357_v23  ;;  %v804_v25 = vld [vmem:[%s1127_s5] sm:$0xff]  ;;  %v805_v26 = vld [vmem:[%s1127_s5 + $0x8] sm:$0xff] }
  0xaf   : > { %v435_v40 = vmax.f32 %v408_v30, 0.0  ;;  %v436_v41 = vmax.f32 %v427_v31, 0.0  ;;  %v559_v31 = vpop.permute.xlu2 %558 }
  0xb4   : > { %v409_v32 = vpop.f32.mrf.mxu0  ;;  %v428_v33 = vpop.f32.mrf.mxu1 }
  0xb5   : > { %v410_v36 = vadd.f32 %v409_v32, %v362_v28  ;;  %v429_v37 = vadd.f32 %v428_v33, %v362_v28 }
  0xb7   : > { %v437_v42 = vmax.f32 %v410_v36, 0.0  ;;  %v438_v43 = vmax.f32 %v429_v37, 0.0  ;;  %v554_v35 = vpop.permute.xlu2 %553 }
  0xb9   : > { %v445_v46 = vpack.c.bf16 %v437_v42, %v435_v40  ;;  %v446_v47 = vpack.c.bf16 %v438_v43, %v436_v41  ;;  %v549_v40 = vpop.permute.xlu1 %548 }
  0xbb   : > { %494 = vmatpush.bf16.msra.mxu2 %v445_v46  ;;  %513 = vmatpush.bf16.msra.mxu3 %v446_v47 }
  0xbf   : > { %495 = vmatpush.bf16.msra.mxu2 %v443_v51  ;;  %514 = vmatpush.bf16.msra.mxu3 %v444_v52 }
  0xc2   : > { %777 = vmatmul.msk.bf16.vlgmr.msra.gmra.mxu2 %vm481_vm2, %v802_v53  ;;  %779 = vmatmul.msk.bf16.vlgmr.msra.gmra.mxu3 %vm481_vm2, %v802_v53 }
  0xd2   : > { %778 = vmatmul.msk.bf16.gmra.mxu2 %vm481_vm2, %v803_v56  ;;  %780 = vmatmul.msk.bf16.gmra.mxu3 %vm481_vm2, %v803_v56 }
 0x145   : > { %v497_v57 = vpop.f32.mrf.mxu2  ;;  %v516_v58 = vpop.f32.mrf.mxu3 }
 0x146   : > { %v498_v11 = vadd.f32 %v497_v57, %v454_v6  ;;  %v517_v12 = vadd.f32 %v516_v58, %v454_v6 }
 0x148   : > { %v526_v21 = vmax.f32 %v498_v11, 0.0  ;;  %v527_v22 = vmax.f32 %v517_v12, 0.0 }
 0x14d   : > { %v499_v59 = vpop.f32.mrf.mxu2  ;;  %v518_v60 = vpop.f32.mrf.mxu3 }
 0x14e   : > { %v500_v7 = vadd.f32 %v499_v59, %v459_v0  ;;  %v519_v8 = vadd.f32 %v518_v60, %v459_v0  ;;  %v628_v59 = vld [vmem:[%s1129_s7] sm:$0x3]  ;;  %v637_v60 = vpop.permute.xlu0 %636 }
 0x150   : > { %v528_v17 = vmax.f32 %v500_v7, 0.0  ;;  %v529_v18 = vmax.f32 %v519_v8, 0.0 }
 0x152   : > { %v538_v23 = vpack.c.bf16 %v528_v17, %v526_v21  ;;  %v539_v24 = vpack.c.bf16 %v529_v18, %v527_v22 }
 0x155   : > { %v502_v62 = vpop.f32.mrf.mxu2  ;;  %v521_v63 = vpop.f32.mrf.mxu3 }
 0x156   : > { %v503_v2 = vadd.f32 %v502_v62, %v464_v61  ;;  %v522_v3 = vadd.f32 %v521_v63, %v464_v61 }
 0x158   : > { %v530_v13 = vmax.f32 %v503_v2, 0.0  ;;  %v531_v14 = vmax.f32 %v522_v3, 0.0 }
 0x15d   : > { %v504_v4 = vpop.f32.mrf.mxu2  ;;  %v523_v5 = vpop.f32.mrf.mxu3 }
 0x15e   : > { %v505_v9 = vadd.f32 %v504_v4, %v469_v1  ;;  %v524_v10 = vadd.f32 %v523_v5, %v469_v1 }
 0x160   : > { %v532_v15 = vmax.f32 %v505_v9, 0.0  ;;  %v533_v16 = vmax.f32 %v524_v10, 0.0 }
 0x162   : > { %v540_v19 = vpack.c.bf16 %v532_v15, %v530_v13  ;;  %v541_v20 = vpack.c.bf16 %v533_v16, %v531_v14 }
 0x164   : > { %588 = vmatpush.bf16.msrb.mxu0 %v540_v19  ;;  %607 = vmatpush.bf16.msrb.mxu1 %v541_v20 }
 0x168   : > { %589 = vmatpush.bf16.msrb.mxu0 %v538_v23  ;;  %608 = vmatpush.bf16.msrb.mxu1 %v539_v24 }
 0x16b   : > { %789 = vmatmul.msk.bf16.vlgmr.msrb.gmra.mxu0 %vm481_vm2, %v804_v25  ;;  %791 = vmatmul.msk.bf16.vlgmr.msrb.gmra.mxu1 %vm481_vm2, %v804_v25 }
 0x17b   : > { %790 = vmatmul.msk.bf16.gmra.mxu0 %vm481_vm2, %v805_v26  ;;  %792 = vmatmul.msk.bf16.gmra.mxu1 %vm481_vm2, %v805_v26 }
 0x1e8   : > { %v591_v27 = vpop.f32.mrf.mxu0  ;;  %v610_v28 = vpop.f32.mrf.mxu1 }
 0x1e9   : > { %v592_v45 = vadd.f32 %v591_v27, %v549_v40  ;;  %v611_v46 = vadd.f32 %v610_v28, %v549_v40 }
 0x1eb   : > { %v620_v55 = vmax.f32 %v592_v45, 0.0  ;;  %v621_v56 = vmax.f32 %v611_v46, 0.0 }
 0x1f0   : > { %v593_v29 = vpop.f32.mrf.mxu0  ;;  %v612_v30 = vpop.f32.mrf.mxu1 }
 0x1f1   : > { %v594_v41 = vadd.f32 %v593_v29, %v554_v35  ;;  %v613_v42 = vadd.f32 %v612_v30, %v554_v35 }
 0x1f3   : > { %v622_v51 = vmax.f32 %v594_v41, 0.0  ;;  %v623_v52 = vmax.f32 %v613_v42, 0.0 }
 0x1f5   : > { %v629_v57 = vpack.c.bf16 %v622_v51, %v620_v55  ;;  %v630_v58 = vpack.c.bf16 %v623_v52, %v621_v56 }
 0x1f8   : > { %v596_v32 = vpop.f32.mrf.mxu0  ;;  %v615_v33 = vpop.f32.mrf.mxu1 }
 0x1f9   : > { %v597_v36 = vadd.f32 %v596_v32, %v559_v31  ;;  %v616_v37 = vadd.f32 %v615_v33, %v559_v31 }
 0x1fb   : > { %v624_v47 = vmax.f32 %v597_v36, 0.0  ;;  %v625_v48 = vmax.f32 %v616_v37, 0.0 }
 0x200   : > { %v598_v38 = vpop.f32.mrf.mxu0  ;;  %v617_v39 = vpop.f32.mrf.mxu1 }
 0x201   : > { %v599_v43 = vadd.f32 %v598_v38, %v564_v34  ;;  %v618_v44 = vadd.f32 %v617_v39, %v564_v34 }
 0x203   : > { %v626_v49 = vmax.f32 %v599_v43, 0.0  ;;  %v627_v50 = vmax.f32 %v618_v44, 0.0 }
 0x205   : > { %v631_v53 = vpack.c.bf16 %v626_v49, %v624_v47  ;;  %v632_v54 = vpack.c.bf16 %v627_v50, %v625_v48 }
 0x207   : > { %648 = vmatpush.bf16.msrb.mxu2 %v631_v53  ;;  %661 = vmatpush.bf16.msrb.mxu3 %v632_v54 }
 0x20b   : > { %649 = vmatpush.bf16.msrb.mxu2 %v629_v57  ;;  %662 = vmatpush.bf16.msrb.mxu3 %v630_v58 }
 0x20e   : > { %793 = vmatmul.msk.bf16.vlgmr.msrb.gmra.mxu2 %vm481_vm2, %v628_v59  ;;  %794 = vmatmul.msk.bf16.vlgmr.msrb.gmra.mxu3 %vm481_vm2, %v628_v59 }
 0x291   : > { %v651_v61 = vpop.f32.mrf.mxu2  ;;  %v664_v62 = vpop.f32.mrf.mxu3 }
 0x292   : > { %v665_v63 = vadd.f32 %v664_v62, %v637_v60  ;;  %v652_v0 = vadd.f32 %v651_v61, %v637_v60 }
 0x294   : > { %v670_v1 = vrot.slane %v665_v63, 4 }
 0x296   : > { %v671_v2 = vsel %vm386_vm0, %v652_v0, %v670_v1 }
 0x297   : > { %673 = vst [vmem:[%s326_s24] sm:$0xff] %v671_v2 }
 0x298   : > { %877 = shalt.err (!%p874_p3)
}
 0x299   : > { %807 = dma.vmem_to_hbm [thread:$0]  (%p1003_p5), %s689_s25, 128, %s691_s26, %s675_s13   ;;  %v653_v3 = vpop.f32.mrf.mxu2  ;;  %v666_v4 = vpop.f32.mrf.mxu3 }
 0x29a PF: > { %p813_p4 = scmp.ge.s32.totalorder %s912_s12, 2  ;;  %s702_s14 = sand.u32 1, %s900_s30  }
 0x29b   : > { %s703_s23 = scalar_lea.sflag [#allocation3], %s702_s14 }
 0x29c   : > { %p810_p7 = pnand %p813_p4, %p1007_p6 }
 0x29e   : > { %p811_p8 = pneg %p810_p7 }
 0x2a0   : > { %895 = dma.done.wait (%p811_p8), %s703_s23, 128  }
 0x2a1   : > { %897 = vsyncadd (%p811_p8), %s703_s23, 4294967168  ;;  %p19_p5 = scmp.ge.s32.totalorder %s990_s15, 4   ;;  %s1134_s30 = smov %s904_s10 }
 0x2a2   : > { %s1135_s10 = smov %s908_s11  ;;  %s1136_s11 = smov %s1001_s18 }
 0x2a3   : > { %s1137_s12 = smov %s990_s15  ;;  %21 = sbr.rel (!%p19_p5) target bundleno = 3 (0x3), region = 91 }
 0x2a8   :  { %709 = vsyncpa [#allocation3], 1 }
 0x2a9   :  { %711 = vsyncpa [#allocation3 + $0x1], 1 }

</bundles_post_ra>
